<compile_context>
chip_gen: v5e
topology: v5e:2x2
jax: 0.10.0
libtpu: 0.0.40
codegen_flags: <defaults>
</compile_context>

<pallas_src>
import jax
import jax.numpy as jnp
import numpy as np
from jax.experimental import pallas as pl
from jax.experimental.pallas import tpu as pltpu

IN_DIM = 28 * 28          # 784
HID_DIM = 128


def _round_up(n: int, m: int) -> int:
    return ((n + m - 1) // m) * m


def denoise_kernel(x_ref, w1_ref, b1_ref, w2_ref, b2_ref, o_ref):
    # x_ref:  (TB, 784) f32      w1_ref: (784, 128) bf16   b1_ref: (1, 128) f32
    # w2_ref: (128, 784) bf16    b2_ref: (1, 784)  f32     o_ref:  (TB, 784) f32
    x = x_ref[...].astype(jnp.bfloat16)                      # in-kernel cast (free, VPU)
    # First linear + ReLU: MXU matmul with f32 accumulation, bias + ReLU on VPU.
    h = jnp.dot(x, w1_ref[...], preferred_element_type=jnp.float32)
    h = jnp.maximum(h + b1_ref[...], 0.0)
    # Second linear: cast activations to bf16 for the MXU, accumulate in f32.
    y = jnp.dot(h.astype(jnp.bfloat16), w2_ref[...],
                preferred_element_type=jnp.float32)
    o_ref[...] = (y + b2_ref[...]).astype(o_ref.dtype)


def denoising_nn_forward(x, w1, b1, w2, b2, *, tb: int = 512):
    """Forward pass.

    x:  (B, 784) f32
    w1: (784, 128) f32   b1: (1, 128) f32      (PyTorch fc[0], W pre-transposed)
    w2: (128, 784) f32   b2: (1, 784) f32      (PyTorch fc[2], W pre-transposed)
    Returns (B, 784) f32.
    """
    B, d_in = x.shape
    assert d_in == IN_DIM

    # One-time operand prep (tiny, weights only): bf16 matmul operands,
    # f32 biases.  x stays f32 in HBM; it is cast in-kernel.
    x_f = x.astype(jnp.float32)
    w1_b = w1.astype(jnp.bfloat16)
    w2_b = w2.astype(jnp.bfloat16)
    b1_f = b1.reshape(1, HID_DIM).astype(jnp.float32)
    b2_f = b2.reshape(1, IN_DIM).astype(jnp.float32)

    # Batch tile: multiple of 8 (f32 sublane), no larger than needed for B.
    tb = _round_up(max(8, min(tb, _round_up(B, 8))), 8)
    grid = (pl.cdiv(B, tb),)   # boundary block (if any) is masked by Pallas

    # Rough VMEM estimate: double-buffered f32 x/out tiles + resident bf16
    # weights (conservatively counted double-buffered) + biases.
    vmem_est = (2 * tb * IN_DIM * 4) * 2 \
        + 2 * (IN_DIM * HID_DIM + HID_DIM * IN_DIM) * 2 \
        + 2 * (HID_DIM + IN_DIM) * 4
    cp_kwargs = dict(dimension_semantics=("parallel",))   # shard tiles over TCs (v7x)
    if vmem_est > 12 * 1024 * 1024:
        # Needed e.g. for tb=1024 on v5e (16 MiB default scoped-VMEM limit).
        cp_kwargs["vmem_limit_bytes"] = int(min(vmem_est + (8 << 20), 96 << 20))

    out = pl.pallas_call(
        denoise_kernel,
        out_shape=jax.ShapeDtypeStruct((B, IN_DIM), jnp.float32),
        grid=grid,
        in_specs=[
            pl.BlockSpec((tb, IN_DIM), lambda i: (i, 0)),        # x: tiled over batch
            pl.BlockSpec((IN_DIM, HID_DIM), lambda i: (0, 0)),   # W1: resident
            pl.BlockSpec((1, HID_DIM), lambda i: (0, 0)),        # b1: resident
            pl.BlockSpec((HID_DIM, IN_DIM), lambda i: (0, 0)),   # W2: resident
            pl.BlockSpec((1, IN_DIM), lambda i: (0, 0)),         # b2: resident
        ],
        out_specs=pl.BlockSpec((tb, IN_DIM), lambda i: (i, 0)),
        compiler_params=pltpu.CompilerParams(**cp_kwargs),
    )(x_f, w1_b, b1_f, w2_b, b2_f)
    return out


def init_params(key):
    """Deterministic init mimicking PyTorch nn.Linear default
    (U[-1/sqrt(fan_in), +1/sqrt(fan_in)]); weights stored as (in, out)."""
    k1, k2, k3, k4 = jax.random.split(key, 4)
    bound1 = 1.0 / np.sqrt(IN_DIM)
    bound2 = 1.0 / np.sqrt(HID_DIM)
    w1 = jax.random.uniform(k1, (IN_DIM, HID_DIM), jnp.float32, -bound1, bound1)
    b1 = jax.random.uniform(k2, (1, HID_DIM), jnp.float32, -bound1, bound1)
    w2 = jax.random.uniform(k3, (HID_DIM, IN_DIM), jnp.float32, -bound2, bound2)
    b2 = jax.random.uniform(k4, (1, IN_DIM), jnp.float32, -bound2, bound2)
    return w1, b1, w2, b2


def _ref_forward(x, w1, b1, w2, b2):
    """Numpy f32 reference mirroring the kernel's bf16 operand rounding
    (documented precision change vs. PyTorch f32); f32 accumulation."""
    def r(a):
        return np.asarray(jnp.asarray(a).astype(jnp.bfloat16).astype(jnp.float32))
    xb, w1b, w2b = r(x), r(w1), r(w2)
    b1n = np.asarray(b1, np.float32).reshape(1, HID_DIM)
    b2n = np.asarray(b2, np.float32).reshape(1, IN_DIM)
    h = np.maximum(xb @ w1b + b1n, 0.0).astype(np.float32)
    hb = r(h)  # kernel casts activations to bf16 before the second matmul
    return (hb @ w2b + b2n).astype(np.float32)


if __name__ == "__main__":
    key = jax.random.PRNGKey(0)
    pkey, xkey, xkey2 = jax.random.split(key, 3)
    w1, b1, w2, b2 = init_params(pkey)

    # Case 1: batch divisible by the tile. tb=16 keeps shapes small while
    # exercising the multi-tile pipelined/parallel path (grid of 4 tiles);
    # production uses the default tb=512.
    B = 64
    x = jax.random.normal(xkey, (B, IN_DIM), jnp.float32)
    out = denoising_nn_forward(x, w1, b1, w2, b2, tb=16)
    out = jax.block_until_ready(out)
    ref = _ref_forward(x, w1, b1, w2, b2)
    np.testing.assert_allclose(np.asarray(out), ref, rtol=2e-3, atol=2e-3)
    assert out.shape == (B, IN_DIM)

    # Case 2: batch NOT divisible by the tile -> masked boundary block
    # (no pad / no trailing slice); rows are independent so valid rows are exact.
    B2 = 50
    x2 = jax.random.normal(xkey2, (B2, IN_DIM), jnp.float32)
    out2 = denoising_nn_forward(x2, w1, b1, w2, b2, tb=16)
    out2 = jax.block_until_ready(out2)
    ref2 = _ref_forward(x2, w1, b1, w2, b2)
    np.testing.assert_allclose(np.asarray(out2), ref2, rtol=2e-3, atol=2e-3)
    assert out2.shape == (B2, IN_DIM)

    print("KERNEL_OK")
</pallas_src>

<mosaic_0001>
module attributes {stable_mosaic.version = 11 : i64} {
  func.func @denoise_kernel(%arg0: i32, %arg1: memref<16x784xf32, #tpu.memory_space<vmem>>, %arg2: memref<784x128xbf16, #tpu.memory_space<vmem>>, %arg3: memref<1x128xf32, #tpu.memory_space<vmem>>, %arg4: memref<128x784xbf16, #tpu.memory_space<vmem>>, %arg5: memref<1x784xf32, #tpu.memory_space<vmem>>, %arg6: memref<16x784xf32, #tpu.memory_space<vmem>>) attributes {dimension_semantics = [#tpu.dimension_semantics<parallel>], iteration_bounds = array<i64: 4>, scalar_prefetch = 0 : i64, scratch_operands = 0 : i64, tpu.core_type = #tpu.core_type<tc>, window_params = [{transform_indices = @transform_0, window_bounds = array<i64: 16, 784>}, {pipeline_mode = #tpu.pipeline_mode<synchronous>, transform_indices = @transform_1, window_bounds = array<i64: 784, 128>}, {pipeline_mode = #tpu.pipeline_mode<synchronous>, transform_indices = @transform_2, window_bounds = array<i64: 1, 128>}, {pipeline_mode = #tpu.pipeline_mode<synchronous>, transform_indices = @transform_3, window_bounds = array<i64: 128, 784>}, {pipeline_mode = #tpu.pipeline_mode<synchronous>, transform_indices = @transform_4, window_bounds = array<i64: 1, 784>}, {transform_indices = @transform_5, window_bounds = array<i64: 16, 784>}]} {
    %c0 = arith.constant 0 : index
    %c0_0 = arith.constant 0 : index
    %0 = vector.load %arg1[%c0, %c0_0] : memref<16x784xf32, #tpu.memory_space<vmem>>, vector<16x784xf32>
    %1 = arith.truncf %0 : vector<16x784xf32> to vector<16x784xbf16>
    %c0_1 = arith.constant 0 : index
    %c0_2 = arith.constant 0 : index
    %2 = vector.load %arg2[%c0_1, %c0_2] : memref<784x128xbf16, #tpu.memory_space<vmem>>, vector<784x128xbf16>
    %cst = arith.constant dense<0.000000e+00> : vector<16x128xf32>
    %3 = tpu.matmul %1, %2, %cst {dimension_numbers = #tpu.dot_dimension_numbers<[1], [0], [0], [1], [0, 0, 1, 1], [], []>} : vector<16x784xbf16>, vector<784x128xbf16>, vector<16x128xf32> -> vector<16x128xf32>
    %c0_3 = arith.constant 0 : index
    %c0_4 = arith.constant 0 : index
    %4 = vector.load %arg3[%c0_3, %c0_4] : memref<1x128xf32, #tpu.memory_space<vmem>>, vector<1x128xf32>
    %5 = vector.broadcast %4 : vector<1x128xf32> to vector<16x128xf32>
    %6 = arith.addf %3, %5 : vector<16x128xf32>
    %cst_5 = arith.constant 0.000000e+00 : f32
    %7 = vector.broadcast %cst_5 : f32 to vector<16x128xf32>
    %8 = arith.maximumf %6, %7 : vector<16x128xf32>
    %9 = arith.truncf %8 : vector<16x128xf32> to vector<16x128xbf16>
    %c0_6 = arith.constant 0 : index
    %c0_7 = arith.constant 0 : index
    %10 = vector.load %arg4[%c0_6, %c0_7] : memref<128x784xbf16, #tpu.memory_space<vmem>>, vector<128x784xbf16>
    %cst_8 = arith.constant dense<0.000000e+00> : vector<16x784xf32>
    %11 = tpu.matmul %9, %10, %cst_8 {dimension_numbers = #tpu.dot_dimension_numbers<[1], [0], [0], [1], [0, 0, 1, 1], [], []>} : vector<16x128xbf16>, vector<128x784xbf16>, vector<16x784xf32> -> vector<16x784xf32>
    %c0_9 = arith.constant 0 : index
    %c0_10 = arith.constant 0 : index
    %12 = vector.load %arg5[%c0_9, %c0_10] : memref<1x784xf32, #tpu.memory_space<vmem>>, vector<1x784xf32>
    %13 = vector.broadcast %12 : vector<1x784xf32> to vector<16x784xf32>
    %14 = arith.addf %11, %13 : vector<16x784xf32>
    %c0_11 = arith.constant 0 : index
    %c0_12 = arith.constant 0 : index
    %15 = vector.load %arg6[%c0_11, %c0_12] : memref<16x784xf32, #tpu.memory_space<vmem>>, vector<16x784xf32>
    tpu.vector_store %arg6[%c0_11, %c0_12], %14 {strides = array<i32>} : memref<16x784xf32, #tpu.memory_space<vmem>>, vector<16x784xf32>,
    return
  }
  func.func @transform_0(%arg0: i32) -> (i32, i32) {
    %c0_i32 = arith.constant 0 : i32
    %c0_i32_0 = arith.constant 0 : i32
    return %arg0, %c0_i32 : i32, i32
  }
  func.func @transform_1(%arg0: i32) -> (i32, i32) {
    %c0_i32 = arith.constant 0 : i32
    %c0_i32_0 = arith.constant 0 : i32
    %c0_i32_1 = arith.constant 0 : i32
    return %c0_i32, %c0_i32_0 : i32, i32
  }
  func.func @transform_2(%arg0: i32) -> (i32, i32) {
    %c0_i32 = arith.constant 0 : i32
    %c0_i32_0 = arith.constant 0 : i32
    %c0_i32_1 = arith.constant 0 : i32
    return %c0_i32, %c0_i32_0 : i32, i32
  }
  func.func @transform_3(%arg0: i32) -> (i32, i32) {
    %c0_i32 = arith.constant 0 : i32
    %c0_i32_0 = arith.constant 0 : i32
    %c0_i32_1 = arith.constant 0 : i32
    return %c0_i32, %c0_i32_0 : i32, i32
  }
  func.func @transform_4(%arg0: i32) -> (i32, i32) {
    %c0_i32 = arith.constant 0 : i32
    %c0_i32_0 = arith.constant 0 : i32
    %c0_i32_1 = arith.constant 0 : i32
    return %c0_i32, %c0_i32_0 : i32, i32
  }
  func.func @transform_5(%arg0: i32) -> (i32, i32) {
    %c0_i32 = arith.constant 0 : i32
    %c0_i32_0 = arith.constant 0 : i32
    return %arg0, %c0_i32 : i32, i32
  }
}

</mosaic_0001>

<bundles_post_ra>
// kernel: tpu_custom_call.1
= control target key start
LH: loop header
LB: loop body
LE: loop exit
PB: predicated region body
PF: predicated region fallthrough
CT: control target
= control target key end

     0   :  { %10 = vsyncpa [#allocation3], 0  ;;  %s2771_s0 = inlined_call_operand.vmem [shape: f32[64,784], index: 0, kind: input, shape index: {}]   ;;  %s2772_s1 = inlined_call_operand.vmem [shape: bf16[784,128], index: 1, kind: input, shape index: {}]   ;;  %s2773_s2 = inlined_call_operand.hbm [shape: f32[1,128], index: 2, kind: input, shape index: {}]   ;;  %s2774_s3 = inlined_call_operand.vmem [shape: bf16[128,784], index: 3, kind: input, shape index: {}]   ;;  %s2775_s4 = inlined_call_operand.hbm [shape: f32[1,784], index: 4, kind: input, shape index: {}]   ;;  %s2776_s5 = inlined_call_operand.hbm [shape: f32[64,784], index: 5, kind: output, shape index: {}]  }
   0x1   :  { %11 = vsyncpa [#allocation6], 0 }
   0x2   :  { %12 = vsyncpa [#allocation4], 0 }
   0x3   :  { %14 = vsyncpa [#allocation4 + $0x1], 0  ;;  %s2136_s18 = smov 0   ;;  %s2138_s19 = smov 0  }
   0x4   :  { %s2140_s20 = smov 0   ;;  %s2142_s21 = smov 0  }
   0x5 LB: > { %s2157_s22 = sadd.s32 4294967295, %s2100_s21   ;;  %s1363_s23 = sadd.s32 4294967294, %s2100_s21   ;;  %s2100_s21 = sphi %s2142_s21, %s2783_s21   ;;  %s2096_s20 = sphi %s2140_s20, %s2782_s20   ;;  %s2092_s19 = sphi %s2138_s19, %s2781_s19   ;;  %s2088_s18 = sphi %s2136_s18, %s2780_s18  }
   0x6   : > { %s2161_s24 = sadd.s32 1, %s2100_s21   ;;  %s137_s25 = sadd.s32 1, %s2096_s20 }
   0x7   : > { %s134_s26 = ssub.s32 %s2100_s21, %s2161_s24  ;;  %p147_p0 = scmp.ne.s32.totalorder %s2096_s20, %s2092_s19 }
   0x8   : > { %p135_p1 = scmp.eq.s32.totalorder %s134_s26, 0  ;;  %p148_p2 = scmp.eq.s32.totalorder %s2157_s22, 3 }
   0x9   : > { %p153_p3 = scmp.ne.s32.totalorder %s2092_s19, %s2088_s18  ;;  %p154_p4 = scmp.eq.s32.totalorder %s1363_s23, 3 }
   0xa   : > { %s2172_s27 = scalar_select %p135_p1, %s2096_s20, %s137_s25  }
   0xb   : > { %p2174_p5 = por %p148_p2, %p147_p0  ;;  %p2178_p6 = por %p154_p4, %p153_p3 }
   0xc   : > { %p1364_p7 = scmp.ge.s32.totalorder %s2100_s21, 1  ;;  %p161_p8 = scmp.lt.s32.totalorder %s2100_s21, 5 }
   0xd   : > { %p1928_p9 = scmp.eq.s32.totalorder %s2157_s22, 0  ;;  %s176_s8 = sshll.u32 %s2773_s2, 4  ;;  %s177_s8 = int_to_ptr.hbm [resolvable:$true] %s176_s8 }
   0xe   : > { %p2185_p10 = pnand %p1364_p7, %p161_p8  ;;  %s2102_s9 = smov [#allocation2]  }
   0xf   : > { %s178_s10 = sshll.u32 %s2102_s9, 4  ;;  %s191_s13 = sshll.u32 %s2775_s4, 4  ;;  %s179_s10 = int_to_ptr.vmem [resolvable:$true] %s178_s10  ;;  %s192_s13 = int_to_ptr.hbm [resolvable:$true] %s191_s13 }
  0x10   : > { %p1917_p11 = pneg %p2185_p10  ;;  %s2103_s14 = smov [#allocation5]  }
  0x11   : > { %s193_s15 = sshll.u32 %s2103_s14, 4  ;;  %216 = sbr.rel (%p2185_p10) target bundleno = 396 (0x18c), region = 40  ;;  %s194_s15 = int_to_ptr.vmem [resolvable:$true] %s193_s15 }
  0x12   : > { %p1918_p12 = pnand %p1928_p9, %p1917_p11 }
  0x14   : > { %1920 = dma.hbm_to_vmem [thread:$0]  (!%p1918_p12), %s177_s8, 16, %s179_s10, [#allocation3]  }
  0x15   : > { %1923 = dma.hbm_to_vmem [thread:$0]  (!%p1918_p12), %s192_s13, 112, %s194_s15, [#allocation6]  }
  0x16   : > { %2075 = dma.done.wait (%p1928_p9), [#allocation3], 16  }
  0x17   : > { %2077 = vsyncadd (%p1928_p9), [#allocation3], 4294967280 }
  0x18   : > { %2079 = dma.done.wait (%p1928_p9), [#allocation6], 112  }
  0x19   : > { %2081 = vsyncadd (%p1928_p9), [#allocation6], 4294967184  ;;  %v1806_v0 = vld [vmem:[%s2772_s1 + $0x38] sm:$0xff]  ;;  %v1805_v4 = vld [vmem:[%s2772_s1 + $0x30] sm:$0xff]  ;;  %s1371_s8 = sshll.u32 %s2157_s22, 1  ;;  %vm677_vm0 = vcmask 130048  }
  0x1a   : > { %v1814_v1 = vld [vmem:[%s2772_s1 + $0x78] sm:$0xff]  ;;  %681 = vmatpush.bf16.msra.mxu0 %v1806_v0  ;;  %v1813_v5 = vld [vmem:[%s2772_s1 + $0x70] sm:$0xff]  ;;  %v1804_v8 = vld [vmem:[%s2772_s1 + $0x28] sm:$0xff]  ;;  %p252_p13 = scmp.lt.s32.totalorder %s1371_s8, 7  ;;  %s1906_s14 = smul.u32 112, %s2157_s22 }
  0x1b   : > { %v1822_v2 = vld [vmem:[%s2772_s1 + $0xb8] sm:$0xff]  ;;  %695 = vmatpush.bf16.msra.mxu1 %v1814_v1  ;;  %v1821_v6 = vld [vmem:[%s2772_s1 + $0xb0] sm:$0xff]  ;;  %v1812_v9 = vld [vmem:[%s2772_s1 + $0x68] sm:$0xff]  ;;  %s2050_s9 = scalar_lea.hbm %s2776_s5, 448 }
  0x1c   : > { %v1830_v3 = vld [vmem:[%s2772_s1 + $0xf8] sm:$0xff]  ;;  %709 = vmatpush.bf16.msra.mxu2 %v1822_v2  ;;  %v1829_v7 = vld [vmem:[%s2772_s1 + $0xf0] sm:$0xff]  ;;  %v1820_v10 = vld [vmem:[%s2772_s1 + $0xa8] sm:$0xff]  ;;  %s2785_s8 = smov (!%p252_p13, %s1371_s8), 7  ;;  %s1275_s17 = scalar_lea.hbm %s2776_s5, %s1906_s14 }
  0x1d   : > { %723 = vmatpush.bf16.msra.mxu3 %v1830_v3  ;;  %v1828_v11 = vld [vmem:[%s2772_s1 + $0xe8] sm:$0xff]  ;;  %v1803_v12 = vld [vmem:[%s2772_s1 + $0x20] sm:$0xff]  ;;  %v1802_v16 = vld [vmem:[%s2772_s1 + $0x18] sm:$0xff]  ;;  %s1905_s23 = smul.u32 56, %s2785_s8  ;;  %s248_s8 = sand.u32 1, %s2092_s19  }
  0x1e   : > { %682 = vmatpush.bf16.msra.mxu0 %v1805_v4  ;;  %v1811_v13 = vld [vmem:[%s2772_s1 + $0x60] sm:$0xff]  ;;  %v1810_v17 = vld [vmem:[%s2772_s1 + $0x58] sm:$0xff]  ;;  %v1801_v20 = vld [vmem:[%s2772_s1 + $0x10] sm:$0xff]  ;;  %s1904_s12 = smul.u32 112, %s248_s8  ;;  %s1278_s22 = sshll.u32 %s1275_s17, 4  ;;  %s1279_s22 = int_to_ptr.hbm [resolvable:$true] %s1278_s22 }
  0x1f   : > { %696 = vmatpush.bf16.msra.mxu1 %v1813_v5  ;;  %v1819_v14 = vld [vmem:[%s2772_s1 + $0xa0] sm:$0xff]  ;;  %v1818_v18 = vld [vmem:[%s2772_s1 + $0x98] sm:$0xff]  ;;  %v1809_v21 = vld [vmem:[%s2772_s1 + $0x50] sm:$0xff]  ;;  %s2297_s13 = scalar_lea.vmem %s2771_s0, %s1905_s23  ;;  %s1263_s25 = scalar_lea.sflag [#allocation4], %s248_s8 }
  0x20   : > { %710 = vmatpush.bf16.msra.mxu2 %v1821_v6  ;;  %v1827_v15 = vld [vmem:[%s2772_s1 + $0xe0] sm:$0xff]  ;;  %v1826_v19 = vld [vmem:[%s2772_s1 + $0xd8] sm:$0xff]  ;;  %v1817_v22 = vld [vmem:[%s2772_s1 + $0x90] sm:$0xff]  ;;  %s2044_s26 = sshra.s32 %s1279_s22, 4  ;;  %s2045_s26 = int_to_ptr.hbm [resolvable:$true] %s2044_s26 }
  0x21   : > { %724 = vmatpush.bf16.msra.mxu3 %v1829_v7  ;;  %v1825_v23 = vld [vmem:[%s2772_s1 + $0xd0] sm:$0xff]  ;;  %v1800_v24 = vld [vmem:[%s2772_s1 + $0x8] sm:$0xff]  ;;  %v1799_v28 = vld [vmem:[%s2772_s1] sm:$0xff]  ;;  %s2046_s30 = scalar_lea.hbm %s2045_s26, 112  ;;  %p2051_p3 = scmp.lt.s32.totalorder %s2045_s26, %s2776_s5 }
  0x22   : > { %683 = vmatpush.bf16.msra.mxu0 %v1804_v8  ;;  %v1808_v25 = vld [vmem:[%s2772_s1 + $0x48] sm:$0xff]  ;;  %v1807_v29 = vld [vmem:[%s2772_s1 + $0x40] sm:$0xff]  ;;  %v267_v31 = vld [vmem:[%s2297_s13 + $0x38] sm:$0xff]  ;;  %p2047_p0 = scmp.ne.s32.totalorder %s2045_s26, %s2046_s30  ;;  %p2052_p4 = scmp.lt.s32.totalorder %s2050_s9, %s2046_s30 }
  0x23   : > { %697 = vmatpush.bf16.msra.mxu1 %v1812_v9  ;;  %v1816_v26 = vld [vmem:[%s2772_s1 + $0x88] sm:$0xff]  ;;  %v260_v30 = vld [vmem:[%s2297_s13] sm:$0xff]  ;;  %v1838_v34 = vld [vmem:[%s2772_s1 + $0x138] sm:$0xff] }
  0x24   : > { %711 = vmatpush.bf16.msra.mxu2 %v1820_v10  ;;  %v1824_v27 = vld [vmem:[%s2772_s1 + $0xc8] sm:$0xff]  ;;  %v268_v33 = vld [vmem:[%s2297_s13 + $0x40] sm:$0xff]  ;;  %v1846_v35 = vld [vmem:[%s2772_s1 + $0x178] sm:$0xff]  ;;  %v274_v40 = vpack.c.bf16 %v267_v31, %v260_v30  ;;  %p2048_p1 = pnand %p2047_p0, %p2174_p5  ;;  %p2053_p7 = por %p2052_p4, %p2051_p3 }
  0x25   : > { %725 = vmatpush.bf16.msra.mxu3 %v1828_v11  ;;  %v261_v32 = vld [vmem:[%s2297_s13 + $0x8] sm:$0xff]  ;;  %v1815_v36 = vld [vmem:[%s2772_s1 + $0x80] sm:$0xff]  ;;  %v262_v38 = vld [vmem:[%s2297_s13 + $0x10] sm:$0xff] }
  0x26   : > { %684 = vmatpush.bf16.msra.mxu0 %v1803_v12  ;;  %v1823_v37 = vld [vmem:[%s2772_s1 + $0xc0] sm:$0xff]  ;;  %v269_v39 = vld [vmem:[%s2297_s13 + $0x48] sm:$0xff]  ;;  %v263_v41 = vld [vmem:[%s2297_s13 + $0x18] sm:$0xff]  ;;  %v275_v43 = vpack.c.bf16 %v268_v33, %v261_v32  ;;  %p2049_p2 = pneg %p2048_p1 }
  0x27   : > { %698 = vmatpush.bf16.msra.mxu1 %v1811_v13  ;;  %v270_v42 = vld [vmem:[%s2297_s13 + $0x50] sm:$0xff]  ;;  %v1847_v44 = vld [vmem:[%s2772_s1 + $0x180] sm:$0xff]  ;;  %v1768_v45 = vld [vmem:[%s2774_s3 + $0x188] sm:$0xf]  ;;  %v276_v52 = vpack.c.bf16 %v269_v39, %v262_v38 }
  0x28   : > { %712 = vmatpush.bf16.msra.mxu2 %v1819_v14  ;;  %v1900_v46 = vld [vmem:[%s2774_s3 + $0x1a0] sm:$0xf0]  ;;  %v1897_v47 = vld [vmem:[%s2774_s3 + $0x18c] sm:$0xf]  ;;  %v1837_v48 = vld [vmem:[%s2772_s1 + $0x130] sm:$0xff]  ;;  %v277_v53 = vpack.c.bf16 %v270_v42, %v263_v41  ;;  %p2054_p8 = pnand %p2053_p7, %p2049_p2 }
  0x29   : > { %726 = vmatpush.bf16.msra.mxu3 %v1827_v15  ;;  %v1845_v49 = vld [vmem:[%s2772_s1 + $0x170] sm:$0xff]  ;;  %v1769_v50 = vor.u32 %v1900_v46, %v1768_v45  ;;  %v1770_v51 = vld [vmem:[%s2774_s3 + $0x1a4] sm:$0xf0]  ;;  %v1835_v57 = vld [vmem:[%s2772_s1 + $0x120] sm:$0xff] }
  0x2a   : > { %685 = vmatpush.bf16.msra.mxu0 %v1802_v16  ;;  %v1773_v54 = vor.u32 %v1897_v47, %v1770_v51  ;;  %v1836_v55 = vld [vmem:[%s2772_s1 + $0x128] sm:$0xff]  ;;  %v1843_v58 = vld [vmem:[%s2772_s1 + $0x160] sm:$0xff]  ;;  %v1834_v59 = vld [vmem:[%s2772_s1 + $0x118] sm:$0xff] }
  0x2b   : > { %699 = vmatpush.bf16.msra.mxu1 %v1810_v17  ;;  %v1844_v56 = vld [vmem:[%s2772_s1 + $0x168] sm:$0xff]  ;;  %v1842_v60 = vld [vmem:[%s2772_s1 + $0x158] sm:$0xff]  ;;  %v266_v61 = vld [vmem:[%s2297_s13 + $0x30] sm:$0xff] }
  0x2c   : > { %713 = vmatpush.bf16.msra.mxu2 %v1818_v18  ;;  %v273_v62 = vld [vmem:[%s2297_s13 + $0x68] sm:$0xff]  ;;  %v1833_v63 = vld [vmem:[%s2772_s1 + $0x110] sm:$0xff]  ;;  %v1831_v6 = vld [vmem:[%s2772_s1 + $0x100] sm:$0xff] }
  0x2d   : > { %727 = vmatpush.bf16.msra.mxu3 %v1826_v19  ;;  %v1841_v0 = vld [vmem:[%s2772_s1 + $0x150] sm:$0xff]  ;;  %v280_v1 = vpack.c.bf16 %v273_v62, %v266_v61  ;;  %v1832_v2 = vld [vmem:[%s2772_s1 + $0x108] sm:$0xff]  ;;  %v1839_v7 = vld [vmem:[%s2772_s1 + $0x140] sm:$0xff] }
  0x2e   : > { %686 = vmatpush.bf16.msra.mxu0 %v1801_v20  ;;  %v1840_v3 = vld [vmem:[%s2772_s1 + $0x148] sm:$0xff]  ;;  %v1776_v4 = vld [vmem:[%s2774_s3 + $0x190] sm:$0xf]  ;;  %v264_v8 = vld [vmem:[%s2297_s13 + $0x20] sm:$0xff] }
  0x2f   : > { %700 = vmatpush.bf16.msra.mxu1 %v1809_v21  ;;  %v1901_v5 = vld [vmem:[%s2774_s3 + $0x1a8] sm:$0xf0]  ;;  %v271_v9 = vld [vmem:[%s2297_s13 + $0x58] sm:$0xff]  ;;  %v272_v11 = vld [vmem:[%s2297_s13 + $0x60] sm:$0xff] }
  0x30   : > { %714 = vmatpush.bf16.msra.mxu2 %v1817_v22  ;;  %v265_v10 = vld [vmem:[%s2297_s13 + $0x28] sm:$0xff]  ;;  %v1777_v12 = vor.u32 %v1901_v5, %v1776_v4  ;;  %v278_v13 = vpack.c.bf16 %v271_v9, %v264_v8  ;;  %v1740_v15 = vld [vmem:[%s2774_s3 + $0x150] sm:$0xf]  ;;  %v1890_v17 = vld [vmem:[%s2774_s3 + $0x154] sm:$0xf]  ;;  %s2719_s13 = scalar_lea.vmem [#allocation7], %s1904_s12 }
  0x31   : > { %728 = vmatpush.bf16.msra.mxu3 %v1825_v23  ;;  %v279_v14 = vpack.c.bf16 %v272_v11, %v265_v10  ;;  %v1893_v16 = vld [vmem:[%s2774_s3 + $0x168] sm:$0xf0]  ;;  %v1742_v19 = vld [vmem:[%s2774_s3 + $0x16c] sm:$0xf0]  ;;  %v1748_v20 = vld [vmem:[%s2774_s3 + $0x158] sm:$0xf] }
  0x32   : > { %687 = vmatpush.bf16.msra.mxu0 %v1800_v24  ;;  %v1741_v18 = vor.u32 %v1893_v16, %v1740_v15  ;;  %v1894_v21 = vld [vmem:[%s2774_s3 + $0x170] sm:$0xf0]  ;;  %v1745_v22 = vor.u32 %v1890_v17, %v1742_v19  ;;  %v1712_v24 = vld [vmem:[%s2774_s3 + $0x118] sm:$0xf]  ;;  %v1887_v30 = vld [vmem:[%s2774_s3 + $0x138] sm:$0xf0] }
  0x33   : > { %701 = vmatpush.bf16.msra.mxu1 %v1808_v25  ;;  %v1749_v23 = vor.u32 %v1894_v21, %v1748_v20  ;;  %v1886_v25 = vld [vmem:[%s2774_s3 + $0x130] sm:$0xf0]  ;;  %v1684_v33 = vld [vmem:[%s2774_s3 + $0xe0] sm:$0xf]  ;;  %v1692_v38 = vld [vmem:[%s2774_s3 + $0xe8] sm:$0xf] }
  0x34   : > { %715 = vmatpush.bf16.msra.mxu2 %v1816_v26  ;;  %v1883_v26 = vld [vmem:[%s2774_s3 + $0x11c] sm:$0xf]  ;;  %v1880_v39 = vld [vmem:[%s2774_s3 + $0x100] sm:$0xf0]  ;;  %v1898_v42 = vld [vmem:[%s2774_s3 + $0x194] sm:$0xf] }
  0x35   : > { %729 = vmatpush.bf16.msra.mxu3 %v1824_v27  ;;  %v1713_v27 = vor.u32 %v1886_v25, %v1712_v24  ;;  %v1693_v41 = vor.u32 %v1880_v39, %v1692_v38  ;;  %v1656_v45 = vld [vmem:[%s2774_s3 + $0xa8] sm:$0xf]  ;;  %v1872_v46 = vld [vmem:[%s2774_s3 + $0xc0] sm:$0xf0]  ;;  %v1869_v47 = vld [vmem:[%s2774_s3 + $0xac] sm:$0xf] }
  0x36   : > { %688 = vmatpush.bf16.msra.mxu0 %v1799_v28  ;;  %v1714_v28 = vld [vmem:[%s2774_s3 + $0x134] sm:$0xf0]  ;;  %v1873_v51 = vld [vmem:[%s2774_s3 + $0xc8] sm:$0xf0]  ;;  %v1630_v61 = vld [vmem:[%s2774_s3 + $0x8c] sm:$0xf0] }
  0x37   : > { %702 = vmatpush.bf16.msra.mxu1 %v1807_v29  ;;  %v1720_v29 = vld [vmem:[%s2774_s3 + $0x120] sm:$0xf]  ;;  %v1717_v31 = vor.u32 %v1883_v26, %v1714_v28  ;;  %v1636_v62 = vld [vmem:[%s2774_s3 + $0x78] sm:$0xf]  ;;  %v1859_v11 = vld [vmem:[%s2774_s3 + $0x58] sm:$0xf0] }
  0x38   : > { %716 = vmatpush.bf16.msra.mxu2 %v1815_v36  ;;  %v1721_v32 = vor.u32 %v1887_v30, %v1720_v29  ;;  %v1600_v5 = vld [vmem:[%s2774_s3 + $0x38] sm:$0xf]  ;;  %v1608_v10 = vld [vmem:[%s2774_s3 + $0x40] sm:$0xf]  ;;  %v1694_v15 = vld [vmem:[%s2774_s3 + $0x104] sm:$0xf0] }
  0x39   : > { %730 = vmatpush.bf16.msra.mxu3 %v1823_v37  ;;  %689 = vmatmul.bf16.vlgmr.msra.gmra.mxu0 %v274_v40  ;;  %v1686_v37 = vld [vmem:[%s2774_s3 + $0xfc] sm:$0xf0]  ;;  %v1602_v9 = vld [vmem:[%s2774_s3 + $0x54] sm:$0xf0]  ;;  %v1848_v19 = vld [vmem:[%s2774_s3 + $0x4] sm:$0xf] }
  0x3a   : > { %737 = vmatpush.bf16.msrb.mxu0 %v1838_v34  ;;  %703 = vmatmul.bf16.vlgmr.msra.gmra.mxu1 %v275_v43  ;;  %v1879_v34 = vld [vmem:[%s2774_s3 + $0xf8] sm:$0xf0]  ;;  %v1778_v43 = vld [vmem:[%s2774_s3 + $0x1ac] sm:$0xf0]  ;;  %v1572_v17 = vld [vmem:[%s2774_s3] sm:$0xf] }
  0x3b   : > { %751 = vmatpush.bf16.msrb.mxu1 %v1846_v35  ;;  %717 = vmatmul.bf16.vlgmr.msra.gmra.mxu2 %v276_v52  ;;  %v1876_v35 = vld [vmem:[%s2774_s3 + $0xe4] sm:$0xf]  ;;  %v1685_v36 = vor.u32 %v1879_v34, %v1684_v33  ;;  %v1574_v21 = vld [vmem:[%s2774_s3 + $0x1c] sm:$0xf0]  ;;  %v1870_v26 = vld [vmem:[%s2774_s3 + $0xb4] sm:$0xf] }
  0x3c   : > { %772 = vmatpush.bf16.msrb.mxu2 %v1847_v44  ;;  %731 = vmatmul.bf16.vlgmr.msra.gmra.mxu3 %v277_v53  ;;  %v1689_v40 = vor.u32 %v1876_v35, %v1686_v37  ;;  %v1781_v44 = vor.u32 %v1898_v42, %v1778_v43  ;;  %v1577_v24 = vor.u32 %v1848_v19, %v1574_v21  ;;  %v1784_v28 = vld [vmem:[%s2774_s3 + $0x198] sm:$0xf]  ;;  %v1902_v30 = vld [vmem:[%s2774_s3 + $0x1b0] sm:$0xf0]  ;;  %v1792_v35 = vld [vmem:[%s2774_s3 + $0x1a0] sm:$0xf] }
  0x3d   : > { %1150 = vmatpush.bf16.msrb.mxu3 %v1769_v50  ;;  %v1664_v50 = vld [vmem:[%s2774_s3 + $0xb0] sm:$0xf]  ;;  %v1785_v33 = vor.u32 %v1902_v30, %v1784_v28  ;;  %v1863_v38 = vld [vmem:[%s2774_s3 + $0x7c] sm:$0xf]  ;;  %v1638_v39 = vld [vmem:[%s2774_s3 + $0x94] sm:$0xf0] }
  0x3e   : > { %738 = vmatpush.bf16.msrb.mxu0 %v1837_v48  ;;  %v1657_v48 = vor.u32 %v1872_v46, %v1656_v45  ;;  %v1665_v53 = vor.u32 %v1873_v51, %v1664_v50  ;;  %v1895_v42 = vld [vmem:[%s2774_s3 + $0x178] sm:$0xf0]  ;;  %v1892_v43 = vld [vmem:[%s2774_s3 + $0x164] sm:$0xf]  ;;  %v1610_v51 = vld [vmem:[%s2774_s3 + $0x5c] sm:$0xf0] }
  0x3f   : > { %752 = vmatpush.bf16.msrb.mxu1 %v1845_v49  ;;  %v1658_v49 = vld [vmem:[%s2774_s3 + $0xc4] sm:$0xf0]  ;;  %v1856_v50 = vld [vmem:[%s2774_s3 + $0x44] sm:$0xf]  ;;  %v1680_v19 = vld [vmem:[%s2774_s3 + $0xc0] sm:$0xf] }
  0x40   : > { %1164 = vmatpush.bf16.msra.mxu2 %v1773_v54  ;;  %v1661_v52 = vor.u32 %v1869_v47, %v1658_v49  ;;  %v1891_v54 = vld [vmem:[%s2774_s3 + $0x15c] sm:$0xf]  ;;  %v1764_v47 = vld [vmem:[%s2774_s3 + $0x168] sm:$0xf]  ;;  %s1276_s23 = sshll.u32 %s2719_s13, 4  ;;  %s1277_s23 = int_to_ptr.vmem [resolvable:$true] %s1276_s23 }
  0x41   : > { %1151 = vmatpush.bf16.msrb.mxu3 %v1741_v18  ;;  %v1851_v18 = vld [vmem:[%s2774_s3 + $0x18] sm:$0xf0]  ;;  %v1652_v28 = vld [vmem:[%s2774_s3 + $0x88] sm:$0xf] }
  0x42   : > { %739 = vmatpush.bf16.msrb.mxu0 %v1836_v55  ;;  %v1750_v55 = vld [vmem:[%s2774_s3 + $0x174] sm:$0xf0]  ;;  %v1573_v20 = vor.u32 %v1851_v18, %v1572_v17 }
  0x43   : > { %753 = vmatpush.bf16.msrb.mxu1 %v1844_v56  ;;  %v1753_v56 = vor.u32 %v1891_v54, %v1750_v55  ;;  %v1888_v54 = vld [vmem:[%s2774_s3 + $0x140] sm:$0xf0]  ;;  %v1885_v55 = vld [vmem:[%s2774_s3 + $0x12c] sm:$0xf]  ;;  %v1674_v18 = vld [vmem:[%s2774_s3 + $0xd4] sm:$0xf0] }
  0x44   : > { %1165 = vmatpush.bf16.msra.mxu2 %v1745_v22  ;;  %v1580_v22 = vld [vmem:[%s2774_s3 + $0x8] sm:$0xf] }
  0x45   : > { %1152 = vmatpush.bf16.msrb.mxu3 %v1713_v27  ;;  %v1666_v27 = vld [vmem:[%s2774_s3 + $0xcc] sm:$0xf0] }
  0x46   : > { %740 = vmatpush.bf16.msrb.mxu0 %v1835_v57  ;;  %v1628_v57 = vld [vmem:[%s2774_s3 + $0x70] sm:$0xf]  ;;  %v1669_v29 = vor.u32 %v1870_v26, %v1666_v27  ;;  %v1646_v27 = vld [vmem:[%s2774_s3 + $0x9c] sm:$0xf0] }
  0x47   : > { %754 = vmatpush.bf16.msrb.mxu1 %v1843_v58  ;;  %v1865_v58 = vld [vmem:[%s2774_s3 + $0x88] sm:$0xf0] }
  0x48   : > { %1166 = vmatpush.bf16.msra.mxu2 %v1717_v31  ;;  %v1899_v31 = vld [vmem:[%s2774_s3 + $0x19c] sm:$0xf] }
  0x49   : > { %1153 = vmatpush.bf16.msrb.mxu3 %v1685_v36  ;;  %v1903_v36 = vld [vmem:[%s2774_s3 + $0x1b8] sm:$0xf0] }
  0x4a   : > { %741 = vmatpush.bf16.msrb.mxu0 %v1834_v59  ;;  %v1862_v59 = vld [vmem:[%s2774_s3 + $0x74] sm:$0xf]  ;;  %v1793_v37 = vor.u32 %v1903_v36, %v1792_v35  ;;  %v1860_v35 = vld [vmem:[%s2774_s3 + $0x60] sm:$0xf0]  ;;  %v1857_v36 = vld [vmem:[%s2774_s3 + $0x4c] sm:$0xf] }
  0x4b   : > { %755 = vmatpush.bf16.msrb.mxu1 %v1842_v60  ;;  %1569 = vmatmul.msk.bf16.vlgmr.msrb.gmra.mxu2 %vm677_vm0, %v280_v1  ;;  %v1629_v60 = vor.u32 %v1865_v58, %v1628_v57 }
  0x4c   : > { %1167 = vmatpush.bf16.msra.mxu2 %v1689_v40  ;;  %v1756_v40 = vld [vmem:[%s2774_s3 + $0x160] sm:$0xf] }
  0x4d   : > { %1154 = vmatpush.bf16.msrb.mxu3 %v1657_v48  ;;  %v1757_v45 = vor.u32 %v1895_v42, %v1756_v40  ;;  %v1896_v48 = vld [vmem:[%s2774_s3 + $0x180] sm:$0xf0]  ;;  %v1624_v40 = vld [vmem:[%s2774_s3 + $0x50] sm:$0xf] }
  0x4e   : > { %742 = vmatpush.bf16.msrb.mxu0 %v1833_v63  ;;  %v1866_v63 = vld [vmem:[%s2774_s3 + $0x90] sm:$0xf0]  ;;  %v1765_v49 = vor.u32 %v1896_v48, %v1764_v47 }
  0x4f   : > { %756 = vmatpush.bf16.msrb.mxu1 %v1841_v0  ;;  %v1633_v0 = vor.u32 %v1862_v59, %v1630_v61  ;;  %v1637_v1 = vor.u32 %v1866_v63, %v1636_v62  ;;  %v1736_v59 = vld [vmem:[%s2774_s3 + $0x130] sm:$0xf]  ;;  %v1849_v63 = vld [vmem:[%s2774_s3 + $0xc] sm:$0xf] }
  0x50   : > { %1168 = vmatpush.bf16.msra.mxu2 %v1661_v52  ;;  %v1728_v52 = vld [vmem:[%s2774_s3 + $0x128] sm:$0xf] }
  0x51   : > { %1155 = vmatpush.bf16.msrb.mxu3 %v1629_v60  ;;  %v1729_v57 = vor.u32 %v1888_v54, %v1728_v52  ;;  %v1889_v60 = vld [vmem:[%s2774_s3 + $0x148] sm:$0xf0]  ;;  %v1596_v52 = vld [vmem:[%s2774_s3 + $0x18] sm:$0xf] }
  0x52   : > { %743 = vmatpush.bf16.msrb.mxu0 %v1832_v2  ;;  %v1884_v2 = vld [vmem:[%s2774_s3 + $0x124] sm:$0xf]  ;;  %v1737_v61 = vor.u32 %v1889_v60, %v1736_v59 }
  0x53   : > { %757 = vmatpush.bf16.msrb.mxu1 %v1840_v3  ;;  %v1722_v3 = vld [vmem:[%s2774_s3 + $0x13c] sm:$0xf0] }
  0x54   : > { %v1725_v4 = vor.u32 %v1884_v2, %v1722_v3  ;;  %1169 = vmatpush.bf16.msra.mxu2 %v1633_v0  ;;  %v1582_v0 = vld [vmem:[%s2774_s3 + $0x24] sm:$0xf0] }
  0x56   : > { %744 = vmatpush.bf16.msrb.mxu0 %v1831_v6  ;;  %v1858_v6 = vld [vmem:[%s2774_s3 + $0x50] sm:$0xf0] }
  0x57   : > { %758 = vmatpush.bf16.msrb.mxu1 %v1839_v7  ;;  %v1855_v7 = vld [vmem:[%s2774_s3 + $0x3c] sm:$0xf]  ;;  %v1601_v8 = vor.u32 %v1858_v6, %v1600_v5  ;;  %v1881_v5 = vld [vmem:[%s2774_s3 + $0x108] sm:$0xf0]  ;;  %v1878_v6 = vld [vmem:[%s2774_s3 + $0xf4] sm:$0xf] }
  0x59   : > { %745 = vmatmul.bf16.vlgmr.msrb.gmra.mxu0 %v278_v13  ;;  %v1609_v13 = vor.u32 %v1859_v11, %v1608_v10  ;;  %1156 = vmatpush.bf16.msrb.mxu3 %v1601_v8  ;;  %v1708_v10 = vld [vmem:[%s2774_s3 + $0xf8] sm:$0xf]  ;;  %v1882_v11 = vld [vmem:[%s2774_s3 + $0x110] sm:$0xf0] }
  0x5a   : > { %1178 = vmatpush.bf16.msra.mxu0 %v1777_v12  ;;  %759 = vmatmul.bf16.vlgmr.msrb.gmra.mxu1 %v279_v14  ;;  %v1605_v12 = vor.u32 %v1855_v7, %v1602_v9  ;;  %v1877_v14 = vld [vmem:[%s2774_s3 + $0xec] sm:$0xf]  ;;  %v1702_v7 = vld [vmem:[%s2774_s3 + $0x10c] sm:$0xf0] }
  0x5b   : > { %1192 = vmatpush.bf16.msra.mxu1 %v1781_v44  ;;  %v1697_v16 = vor.u32 %v1877_v14, %v1694_v15  ;;  %v1758_v44 = vld [vmem:[%s2774_s3 + $0x17c] sm:$0xf0]  ;;  %v1705_v9 = vor.u32 %v1878_v6, %v1702_v7  ;;  %v1672_v14 = vld [vmem:[%s2774_s3 + $0xb8] sm:$0xf]  ;;  %v1874_v15 = vld [vmem:[%s2774_s3 + $0xd0] sm:$0xf0] }
  0x5c   : > { %1170 = vmatpush.bf16.msra.mxu2 %v1605_v12  ;;  %v1761_v46 = vor.u32 %v1892_v43, %v1758_v44  ;;  %v1709_v12 = vor.u32 %v1882_v11, %v1708_v10  ;;  %v1673_v17 = vor.u32 %v1874_v15, %v1672_v14  ;;  %v846_v14 = vld [vmem:[#allocation5] sm:$0x7f] }
  0x5d   : > { %1157 = vmatpush.bf16.msrb.mxu3 %v1573_v20  ;;  %v1875_v20 = vld [vmem:[%s2774_s3 + $0xd8] sm:$0xf0]  ;;  %v850_v15 = vperm.slane %v846_v14, 2 }
  0x5e   : > { %1179 = vmatpush.bf16.msra.mxu0 %v1749_v23  ;;  %v1852_v23 = vld [vmem:[%s2774_s3 + $0x20] sm:$0xf0] }
  0x5f   : > { %1193 = vmatpush.bf16.msra.mxu1 %v1753_v56  ;;  %v1581_v25 = vor.u32 %v1852_v23, %v1580_v22  ;;  %v1730_v56 = vld [vmem:[%s2774_s3 + $0x144] sm:$0xf0]  ;;  %v1681_v22 = vor.u32 %v1875_v20, %v1680_v19  ;;  %v1644_v23 = vld [vmem:[%s2774_s3 + $0x80] sm:$0xf] }
  0x60   : > { %1171 = vmatpush.bf16.msra.mxu2 %v1577_v24  ;;  %v1733_v58 = vor.u32 %v1885_v55, %v1730_v56  ;;  %v1867_v24 = vld [vmem:[%s2774_s3 + $0x98] sm:$0xf0] }
  0x61   : > { %1206 = vmatpush.bf16.msra.mxu3 %v1785_v33  ;;  %v1645_v30 = vor.u32 %v1867_v24, %v1644_v23 }
  0x62   : > { %1180 = vmatpush.bf16.msra.mxu0 %v1721_v32  ;;  %v1786_v32 = vld [vmem:[%s2774_s3 + $0x1b4] sm:$0xf0] }
  0x63   : > { %1194 = vmatpush.bf16.msra.mxu1 %v1725_v4  ;;  %v1789_v34 = vor.u32 %v1899_v31, %v1786_v32  ;;  %v1585_v4 = vor.u32 %v1849_v63, %v1582_v0  ;;  %v1616_v32 = vld [vmem:[%s2774_s3 + $0x48] sm:$0xf] }
  0x64   : > { %v1617_v44 = vor.u32 %v1860_v35, %v1616_v32 }
  0x65   : > { %1220 = vmatpush.bf16.msrb.mxu2 %v1789_v34  ;;  %1207 = vmatpush.bf16.msra.mxu3 %v1757_v45 }
  0x66   : > { %1181 = vmatpush.bf16.msra.mxu0 %v1693_v41  ;;  %v1641_v41 = vor.u32 %v1863_v38, %v1638_v39 }
  0x67   : > { %1195 = vmatpush.bf16.msra.mxu1 %v1697_v16  ;;  %v1871_v16 = vld [vmem:[%s2774_s3 + $0xbc] sm:$0xf] }
  0x68   : > { %v1677_v21 = vor.u32 %v1871_v16, %v1674_v18  ;;  %v851_v16 = vperm.slane %v846_v14, 3 }
  0x69   : > { %1221 = vmatpush.bf16.msrb.mxu2 %v1761_v46  ;;  %1208 = vmatpush.bf16.msra.mxu3 %v1729_v57  ;;  %v1588_v46 = vld [vmem:[%s2774_s3 + $0x10] sm:$0xf] }
  0x6a   : > { %1182 = vmatpush.bf16.msra.mxu0 %v1665_v53  ;;  %v1613_v53 = vor.u32 %v1856_v50, %v1610_v51  ;;  %v1850_v50 = vld [vmem:[%s2774_s3 + $0x14] sm:$0xf]  ;;  %v1590_v51 = vld [vmem:[%s2774_s3 + $0x2c] sm:$0xf0] }
  0x6b   : > { %1196 = vmatpush.bf16.msra.mxu1 %v1669_v29  ;;  %v1868_v29 = vld [vmem:[%s2774_s3 + $0xa0] sm:$0xf0]  ;;  %v1593_v56 = vor.u32 %v1850_v50, %v1590_v51 }
  0x6c   : > { %v1653_v34 = vor.u32 %v1868_v29, %v1652_v28 }
  0x6d   : > { %1222 = vmatpush.bf16.msrb.mxu2 %v1733_v58 }
  0x6e   : > { %1183 = vmatpush.bf16.msra.mxu0 %v1637_v1  ;;  %v1700_v1 = vld [vmem:[%s2774_s3 + $0xf0] sm:$0xf] }
  0x6f   : > { %1197 = vmatpush.bf16.msra.mxu1 %v1641_v41  ;;  %v1701_v8 = vor.u32 %v1881_v5, %v1700_v1  ;;  %v1861_v41 = vld [vmem:[%s2774_s3 + $0x68] sm:$0xf0] }
  0x70   : > { %v1625_v48 = vor.u32 %v1861_v41, %v1624_v40 }
  0x71   : > { %1209 = vmatpush.bf16.msra.mxu3 %v1701_v8  ;;  %1223 = vmatpush.bf16.msrb.mxu2 %v1705_v9 }
  0x72   : > { %1184 = vmatpush.bf16.msra.mxu0 %v1609_v13  ;;  %v1969_v13 = vld [vmem:[#allocation2] ss:$0 sm:$0xff] }
  0x73   : > { %1198 = vmatpush.bf16.msra.mxu1 %v1613_v53  ;;  %v1854_v53 = vld [vmem:[%s2774_s3 + $0x30] sm:$0xf0] }
  0x74   : > { %v1597_v58 = vor.u32 %v1854_v53, %v1596_v52 }
  0x75   : > { %1210 = vmatpush.bf16.msra.mxu3 %v1673_v17  ;;  %1224 = vmatpush.bf16.msrb.mxu2 %v1677_v21  ;;  %v848_v21 = vperm.slane %v846_v14, 0 }
  0x76   : > { %1185 = vmatpush.bf16.msra.mxu0 %v1581_v25  ;;  %v1864_v25 = vld [vmem:[%s2774_s3 + $0x84] sm:$0xf] }
  0x77   : > { %1199 = vmatpush.bf16.msra.mxu1 %v1585_v4  ;;  %v1649_v31 = vor.u32 %v1864_v25, %v1646_v27 }
  0x79   : > { %1211 = vmatpush.bf16.msra.mxu3 %v1645_v30  ;;  %1225 = vmatpush.bf16.msrb.mxu2 %v1649_v31 }
  0x7a   : > { %1234 = vmatpush.bf16.msrb.mxu0 %v1793_v37  ;;  %v1618_v37 = vld [vmem:[%s2774_s3 + $0x64] sm:$0xf0] }
  0x7b   : > { %v1621_v45 = vor.u32 %v1857_v36, %v1618_v37 }
  0x7d   : > { %1212 = vmatpush.bf16.msra.mxu3 %v1617_v44  ;;  %1226 = vmatpush.bf16.msrb.mxu2 %v1621_v45 }
  0x7e   : > { %1235 = vmatpush.bf16.msrb.mxu0 %v1765_v49  ;;  %v1853_v49 = vld [vmem:[%s2774_s3 + $0x28] sm:$0xf0] }
  0x7f   : > { %v1589_v55 = vor.u32 %v1853_v49, %v1588_v46 }
  0x81   : > { %1213 = vmatpush.bf16.msra.mxu3 %v1589_v55  ;;  %1227 = vmatpush.bf16.msrb.mxu2 %v1593_v56 }
  0x82   : > { %1236 = vmatpush.bf16.msrb.mxu0 %v1737_v61 }
  0x86   : > { %1237 = vmatpush.bf16.msrb.mxu0 %v1709_v12 }
  0x8a   : > { %1238 = vmatpush.bf16.msrb.mxu0 %v1681_v22  ;;  %v849_v22 = vperm.slane %v846_v14, 1 }
  0x8e   : > { %1239 = vmatpush.bf16.msrb.mxu0 %v1653_v34 }
  0x92   : > { %1240 = vmatpush.bf16.msrb.mxu0 %v1625_v48 }
  0x96   : > { %1241 = vmatpush.bf16.msrb.mxu0 %v1597_v58 }
  0xb6   : > { %v690_v62 = vpop.f32.mrf.mxu0 }
  0xb7   : > { %v704_v2 = vpop.f32.mrf.mxu1  ;;  %v691_v26 = vadd.f32 %v1969_v13, %v690_v62 }
  0xb9   : > { %v705_v42 = vadd.f32 %v704_v2, %v691_v26 }
  0xbe   : > { %v2626_v3 = vpop.f32.mrf.mxu2  ;;  %v692_v33 = vpop.f32.mrf.mxu0 }
  0xbf   : > { %v706_v38 = vpop.f32.mrf.mxu1  ;;  %v732_v43 = vpop.f32.mrf.mxu3  ;;  %v693_v47 = vadd.f32 %v1969_v13, %v692_v33  ;;  %v719_v54 = vadd.f32 %v2626_v3, %v705_v42  ;;  %v854_v33 = vperm.slane %v846_v14, 6 }
  0xc1   : > { %v707_v57 = vadd.f32 %v706_v38, %v693_v47  ;;  %v733_v61 = vadd.f32 %v732_v43, %v719_v54  ;;  %v852_v38 = vperm.slane %v846_v14, 4 }
  0xc6   : > { %v720_v39 = vpop.f32.mrf.mxu2 }
  0xc7   : > { %v721_v63 = vadd.f32 %v720_v39, %v707_v57  ;;  %v734_v1 = vpop.f32.mrf.mxu3  ;;  %v853_v39 = vperm.slane %v846_v14, 5 }
  0xc9   : > { %v735_v2 = vadd.f32 %v734_v1, %v721_v63 }
  0xce   : > { %v774_v62 = vpop.f32.mrf.mxu2 }
  0xd6   : > { %v746_v59 = vpop.f32.mrf.mxu0  ;;  %v776_v9 = vpop.f32.mrf.mxu2 }
  0xd7   : > { %v760_v60 = vpop.f32.mrf.mxu1  ;;  %v747_v0 = vadd.f32 %v746_v59, %v733_v61 }
  0xd9   : > { %v761_v4 = vadd.f32 %v760_v60, %v747_v0 }
  0xdb   : > { %v775_v7 = vadd.f32 %v774_v62, %v761_v4 }
  0xdd   : > { %v779_v11 = vmax.f32 %v775_v7, 0.0 }
  0xde   : > { %v748_v3 = vpop.f32.mrf.mxu0 }
  0xdf   : > { %v749_v5 = vadd.f32 %v748_v3, %v735_v2  ;;  %v762_v6 = vpop.f32.mrf.mxu1 }
  0xe1   : > { %v763_v8 = vadd.f32 %v762_v6, %v749_v5 }
  0xe3   : > { %v777_v10 = vadd.f32 %v776_v9, %v763_v8 }
  0xe5   : > { %v780_v12 = vmax.f32 %v777_v10, 0.0 }
  0xe7   : > { %v781_v13 = vpack.c.bf16 %v780_v12, %v779_v11 }
  0xe9   : > { %1158 = vmatmul.bf16.vlgmr.msrb.gmra.mxu3 %v781_v13  ;;  %1172 = vmatmul.bf16.vlgmr.msra.gmra.mxu2 %v781_v13 }
  0xea   : > { %1186 = vmatmul.bf16.vlgmr.msra.gmra.mxu0 %v781_v13  ;;  %1200 = vmatmul.bf16.vlgmr.msra.gmra.mxu1 %v781_v13 }
  0xf9   : > { %1214 = vmatmul.bf16.vlgmr.msra.gmra.mxu3 %v781_v13  ;;  %1228 = vmatmul.bf16.vlgmr.msrb.gmra.mxu2 %v781_v13 }
  0xfa   : > { %1242 = vmatmul.bf16.vlgmr.msrb.gmra.mxu0 %v781_v13 }
 0x167   : > { %v1187_v17 = vpop.f32.mrf.mxu0  ;;  %v1201_v18 = vpop.f32.mrf.mxu1 }
 0x168   : > { %v1188_v19 = vadd.f32 %v1187_v17, %v850_v15  ;;  %v1202_v20 = vadd.f32 %v1201_v18, %v851_v16 }
 0x16a   : > { %1250 = vst [vmem:[%s2719_s13 + $0x10] sm:$0xff] %v1188_v19 }
 0x16b   : > { %1251 = vst [vmem:[%s2719_s13 + $0x18] sm:$0xff] %v1202_v20 }
 0x16c   : > { %v1159_v23 = vpop.f32.mrf.mxu3  ;;  %v1173_v24 = vpop.f32.mrf.mxu2 }
 0x16d   : > { %v1160_v25 = vadd.f32 %v1159_v23, %v848_v21  ;;  %v1174_v26 = vadd.f32 %v1173_v24, %v849_v22 }
 0x16f   : > { %1248 = vst [vmem:[%s2719_s13] sm:$0xff] %v1160_v25  ;;  %v1189_v27 = vpop.f32.mrf.mxu0  ;;  %v1203_v28 = vpop.f32.mrf.mxu1 }
 0x170   : > { %1249 = vst [vmem:[%s2719_s13 + $0x8] sm:$0xff] %v1174_v26  ;;  %v1190_v29 = vadd.f32 %v1189_v27, %v850_v15  ;;  %v1204_v30 = vadd.f32 %v1203_v28, %v851_v16 }
 0x172   : > { %1257 = vst [vmem:[%s2719_s13 + $0x48] sm:$0xff] %v1190_v29 }
 0x173   : > { %1258 = vst [vmem:[%s2719_s13 + $0x50] sm:$0xff] %v1204_v30 }
 0x174   : > { %v1161_v31 = vpop.f32.mrf.mxu3  ;;  %v1175_v32 = vpop.f32.mrf.mxu2 }
 0x175   : > { %v1162_v34 = vadd.f32 %v1161_v31, %v848_v21  ;;  %v1176_v35 = vadd.f32 %v1175_v32, %v849_v22 }
 0x177   : > { %1255 = vst [vmem:[%s2719_s13 + $0x38] sm:$0xff] %v1162_v34  ;;  %v1243_v36 = vpop.f32.mrf.mxu0 }
 0x178   : > { %1256 = vst [vmem:[%s2719_s13 + $0x40] sm:$0xff] %v1176_v35  ;;  %v1244_v37 = vadd.f32 %v1243_v36, %v854_v33 }
 0x17a   : > { %1254 = vst.msk [vmem:[%s2719_s13 + $0x30] sm:$0xff] %vm677_vm0, %v1244_v37 }
 0x17c   : > { %v1215_v40 = vpop.f32.mrf.mxu3  ;;  %v1229_v41 = vpop.f32.mrf.mxu2 }
 0x17d   : > { %v1216_v42 = vadd.f32 %v1215_v40, %v852_v38  ;;  %v1230_v43 = vadd.f32 %v1229_v41, %v853_v39 }
 0x17f   : > { %1252 = vst [vmem:[%s2719_s13 + $0x20] sm:$0xff] %v1216_v42  ;;  %v1245_v44 = vpop.f32.mrf.mxu0 }
 0x180   : > { %1253 = vst [vmem:[%s2719_s13 + $0x28] sm:$0xff] %v1230_v43  ;;  %v1246_v45 = vadd.f32 %v1245_v44, %v854_v33 }
 0x182   : > { %1261 = vst.msk [vmem:[%s2719_s13 + $0x68] sm:$0xff] %vm677_vm0, %v1246_v45 }
 0x184   : > { %v1217_v46 = vpop.f32.mrf.mxu3  ;;  %v1231_v47 = vpop.f32.mrf.mxu2 }
 0x185   : > { %v1218_v48 = vadd.f32 %v1217_v46, %v852_v38  ;;  %v1232_v49 = vadd.f32 %v1231_v47, %v853_v39 }
 0x187   : > { %1259 = vst [vmem:[%s2719_s13 + $0x58] sm:$0xff] %v1218_v48 }
 0x188   : > { %1260 = vst [vmem:[%s2719_s13 + $0x60] sm:$0xff] %v1232_v49 }
 0x189   : > { %2057 = shalt.err (!%p2054_p8)
}
 0x18a   : > { %s2104_s8 = smov 896   ;;  %s2105_s12 = smov 56  }
 0x18b   : > { %1915 = dma.vmem_to_hbm [thread:$0]  (%p2174_p5), %s1277_s23, 1792, %s1279_s22, %s1263_s25, %s2104_s8, %s2104_s8, %s2105_s12  }
 0x18c PF: > { %p1932_p9 = scmp.ge.s32.totalorder %s2100_s21, 2  ;;  %s1293_s13 = sand.u32 1, %s2088_s18  }
 0x18d   : > { %s1294_s14 = scalar_lea.sflag [#allocation4], %s1293_s13 }
 0x18e   : > { %p1925_p10 = pnand %p1932_p9, %p2178_p6 }
 0x190   : > { %p1926_p11 = pneg %p1925_p10 }
 0x192   : > { %2083 = dma.done.wait (%p1926_p11), %s1294_s14, 1792  }
 0x193   : > { %2085 = vsyncadd (%p1926_p11), %s1294_s14, 4294965504  ;;  %p17_p12 = scmp.ge.s32.totalorder %s2161_s24, 6   ;;  %s2780_s18 = smov %s2092_s19 }
 0x194   : > { %s2781_s19 = smov %s2096_s20  ;;  %s2782_s20 = smov %s2172_s27 }
 0x195   : > { %s2783_s21 = smov %s2161_s24  ;;  %19 = sbr.rel (!%p17_p12) target bundleno = 5 (0x5), region = 84 }
 0x19a   :  { %1300 = vsyncpa [#allocation3], 1 }
 0x19b   :  { %1302 = vsyncpa [#allocation3 + $0x1], 1 }
 0x19c   :  { %1303 = vsyncpa [#allocation6], 1 }
 0x19d   :  { %1304 = vsyncpa [#allocation4], 1 }
 0x19e   :  { %1306 = vsyncpa [#allocation4 + $0x1], 1 }

</bundles_post_ra>
